<compile_context>
chip_gen: v7x
topology: tpu7x:2x2x1
jax: 0.10.0
libtpu: 0.0.40
codegen_flags: <defaults>
</compile_context>

<pallas_src>
import jax
import jax.numpy as jnp
from jax import lax
from jax.experimental import pallas as pl
from jax.experimental.pallas import tpu as pltpu

POOL_K = 2  # AvgPool2d kernel_size = stride = 2


def _pick_tile(full, target):
    """Largest divisor of `full` that is <= target and 128- (else 8-) aligned,
    falling back to the full extent (allowed when block == array dim)."""
    if full <= target:
        return full
    for align in (128, 8):
        t = (target // align) * align
        while t >= align:
            if full % t == 0:
                return t
            t -= align
    return full


def _choose_tiles(n_half, m_half, D, in_bytes, budget_bytes):
    """Pick (tn2, tm2) so the double-buffered VMEM footprint fits the budget.

    Footprint per step:
      inputs : 4 arrays of (tile, D) * in_bytes, each double-buffered
      output : (tn2, tm2) f32, double-buffered
    """
    for target in (512, 384, 256, 128, 64, 8):
        tn2 = _pick_tile(n_half, target)
        tm2 = _pick_tile(m_half, target)
        in_foot = 2 * 2 * (tn2 + tm2) * D * in_bytes  # even+odd, double-buffered
        out_foot = 2 * tn2 * tm2 * 4
        if in_foot + out_foot <= budget_bytes:
            return tn2, tm2, in_foot + out_foot
    # Smallest aligned option; let the compiler limit absorb the rest.
    tn2 = _pick_tile(n_half, 8)
    tm2 = _pick_tile(m_half, 8)
    foot = 2 * 2 * (tn2 + tm2) * D * in_bytes + 2 * tn2 * tm2 * 4
    return tn2, tm2, foot


def _mpdist_kernel(params_ref, xe_ref, xo_ref, ye_ref, yo_ref, o_ref):
    # params_ref: SMEM (2,)            -> [alpha, beta]
    # xe_ref/xo_ref: VMEM (1, tn2, D)  even/odd rows of img_embs tile
    # ye_ref/yo_ref: VMEM (1, tm2, D)  even/odd rows of gene_embs tile
    # o_ref:        VMEM (1, tn2, tm2) pooled output tile
    alpha = params_ref[0]
    beta = params_ref[1]

    xe = xe_ref[0]  # (tn2, D)
    xo = xo_ref[0]
    ye = ye_ref[0]  # (tm2, D)
    yo = yo_ref[0]

    def sig_dot(a, b):
        # cosine_sim tile: a @ b.T (contract over feature dim), f32 accumulate.
        d = lax.dot_general(
            a, b, (((1,), (1,)), ((), ())), preferred_element_type=jnp.float32
        )
        return jax.nn.sigmoid(alpha * d + beta)

    # Mean of the four even/odd sub-maps == 2x2 average pool of sigmoid(dist).
    acc = sig_dot(xe, ye)
    acc = acc + sig_dot(xe, yo)
    acc = acc + sig_dot(xo, ye)
    acc = acc + sig_dot(xo, yo)
    o_ref[0] = (acc * 0.25).astype(o_ref.dtype)


def mpdistance(img_embs, gene_embs, alpha, beta, compute_dtype=None):
    """img_embs: (B, N, D), gene_embs: (B, M, D) -> (B, N//2, M//2)."""
    B, N, D = img_embs.shape
    Bm, M, Dm = gene_embs.shape
    assert B == Bm and D == Dm

    # AvgPool2d(2, 2) silently truncates odd trailing rows/cols — match that.
    n_half, m_half = N // POOL_K, M // POOL_K
    img_embs = img_embs[:, : n_half * POOL_K]
    gene_embs = gene_embs[:, : m_half * POOL_K]

    if compute_dtype is not None:
        img_embs = img_embs.astype(compute_dtype)
        gene_embs = gene_embs.astype(compute_dtype)
    in_bytes = jnp.dtype(img_embs.dtype).itemsize

    # Host-side even/odd row split (cheap one-time XLA slices; keeps the kernel
    # free of strided / cross-sublane accesses).
    x_even = img_embs[:, 0::2, :]
    x_odd = img_embs[:, 1::2, :]
    y_even = gene_embs[:, 0::2, :]
    y_odd = gene_embs[:, 1::2, :]

    # VMEM-aware tile choice (~20 MiB working-set budget → safe on all chips).
    tn2, tm2, footprint = _choose_tiles(
        n_half, m_half, D, in_bytes, budget_bytes=20 * 1024 * 1024
    )
    grid = (B, n_half // tn2, m_half // tm2)
    vmem_limit = min(int(footprint * 1.5) + (8 << 20), 48 << 20)

    # Robust to python scalars, 0-d arrays, or shape-(1,) parameters.
    params = jnp.concatenate(
        [
            jnp.asarray(alpha, jnp.float32).reshape(-1)[:1],
            jnp.asarray(beta, jnp.float32).reshape(-1)[:1],
        ]
    )

    x_spec = pl.BlockSpec((1, tn2, D), lambda b, i, j: (b, i, 0))
    y_spec = pl.BlockSpec((1, tm2, D), lambda b, i, j: (b, j, 0))

    # TODO(synk): if D grows beyond a few thousand, add an "arbitrary" K axis
    # over D with a VMEM accumulator instead of loading full (tile, D) blocks.
    return pl.pallas_call(
        _mpdist_kernel,
        out_shape=jax.ShapeDtypeStruct((B, n_half, m_half), jnp.float32),
        grid_spec=pltpu.PrefetchScalarGridSpec(
            num_scalar_prefetch=0,
            grid=grid,
            in_specs=[
                pl.BlockSpec(memory_space=pltpu.MemorySpace.SMEM),  # [alpha, beta]
                x_spec,  # img_embs even rows
                x_spec,  # img_embs odd rows
                y_spec,  # gene_embs even rows
                y_spec,  # gene_embs odd rows
            ],
            out_specs=pl.BlockSpec((1, tn2, tm2), lambda b, i, j: (b, i, j)),
        ),
        compiler_params=pltpu.CompilerParams(
            dimension_semantics=("parallel", "parallel", "parallel"),
            vmem_limit_bytes=vmem_limit,
        ),
    )(params, x_even, x_odd, y_even, y_odd)


def _reference(img_embs, gene_embs, alpha, beta, pool_k=POOL_K):
    dist = jnp.einsum("bnd,bmd->bnm", img_embs, gene_embs)
    s = jax.nn.sigmoid(alpha * dist + beta)
    B, N, M = s.shape
    s = s[:, : (N // pool_k) * pool_k, : (M // pool_k) * pool_k]
    s = s.reshape(B, N // pool_k, pool_k, M // pool_k, pool_k)
    return s.mean(axis=(2, 4))


if __name__ == "__main__":
    key = jax.random.PRNGKey(0)
    kx, ky, kx2, ky2 = jax.random.split(key, 4)

    alpha, beta = 1.0, 0.0  # exactly as in __init__: ones(1), zeros(1)

    # --- small test (module-consistent shapes) -------------------------------
    B, N, M, D = 2, 16, 16, 32
    img = jax.random.normal(kx, (B, N, D), dtype=jnp.float32)
    gene = jax.random.normal(ky, (B, M, D), dtype=jnp.float32)
    # L2-normalize (cosine_sim assumes normalized inputs).
    img = img / jnp.linalg.norm(img, axis=-1, keepdims=True)
    gene = gene / jnp.linalg.norm(gene, axis=-1, keepdims=True)

    out = jax.block_until_ready(mpdistance(img, gene, alpha, beta))
    ref = _reference(img, gene, alpha, beta)
    assert out.shape == (B, N // POOL_K, M // POOL_K)
    assert jnp.max(jnp.abs(out - ref)) < 1e-5

    # bf16-MXU fast path (looser tolerance: bf16 inputs, f32 accumulation).
    out_bf16 = jax.block_until_ready(
        mpdistance(img, gene, alpha, beta, compute_dtype=jnp.bfloat16)
    )
    assert jnp.max(jnp.abs(out_bf16 - ref)) < 2e-2

    # --- medium test: exercises the (B, N-tiles, M-tiles) grid ----------------
    B2, N2, M2, D2 = 2, 1024, 512, 64
    img2 = jax.random.normal(kx2, (B2, N2, D2), dtype=jnp.float32)
    gene2 = jax.random.normal(ky2, (B2, M2, D2), dtype=jnp.float32)
    img2 = img2 / jnp.linalg.norm(img2, axis=-1, keepdims=True)
    gene2 = gene2 / jnp.linalg.norm(gene2, axis=-1, keepdims=True)

    out2 = jax.block_until_ready(mpdistance(img2, gene2, alpha, beta))
    ref2 = _reference(img2, gene2, alpha, beta)
    assert out2.shape == (B2, N2 // POOL_K, M2 // POOL_K)
    # Tolerance covers MXU-vs-XLA f32 matmul precision-mode differences; any
    # tiling/indexing bug would produce O(0.1) errors.
    assert jnp.max(jnp.abs(out2 - ref2)) < 2e-3

    print("KERNEL_OK")
</pallas_src>

<mosaic_0001>
module attributes {stable_mosaic.version = 11 : i64} {
  func.func @_mpdist_kernel(%arg0: i32, %arg1: i32, %arg2: i32, %arg3: memref<2xf32, #tpu.memory_space<smem>>, %arg4: memref<1x8x32xf32, #tpu.memory_space<vmem>>, %arg5: memref<1x8x32xf32, #tpu.memory_space<vmem>>, %arg6: memref<1x8x32xf32, #tpu.memory_space<vmem>>, %arg7: memref<1x8x32xf32, #tpu.memory_space<vmem>>, %arg8: memref<1x8x8xf32, #tpu.memory_space<vmem>>) attributes {dimension_semantics = [#tpu.dimension_semantics<parallel>, #tpu.dimension_semantics<parallel>, #tpu.dimension_semantics<parallel>], iteration_bounds = array<i64: 2, 1, 1>, scalar_prefetch = 0 : i64, scratch_operands = 0 : i64, tpu.core_type = #tpu.core_type<tc>, window_params = [{transform_indices = @transform_0, window_bounds = array<i64: 2>}, {transform_indices = @transform_1, window_bounds = array<i64: 1, 8, 32>}, {transform_indices = @transform_2, window_bounds = array<i64: 1, 8, 32>}, {transform_indices = @transform_3, window_bounds = array<i64: 1, 8, 32>}, {transform_indices = @transform_4, window_bounds = array<i64: 1, 8, 32>}, {transform_indices = @transform_5, window_bounds = array<i64: 1, 8, 8>}]} {
    %c0 = arith.constant 0 : index
    %0 = memref.load %arg3[%c0] : memref<2xf32, #tpu.memory_space<smem>>
    %c1 = arith.constant 1 : index
    %1 = memref.load %arg3[%c1] : memref<2xf32, #tpu.memory_space<smem>>
    %c0_0 = arith.constant 0 : index
    %c0_1 = arith.constant 0 : index
    %c0_2 = arith.constant 0 : index
    %2 = vector.load %arg4[%c0_0, %c0_1, %c0_2] : memref<1x8x32xf32, #tpu.memory_space<vmem>>, vector<1x8x32xf32>
    %3 = vector.shape_cast %2 : vector<1x8x32xf32> to vector<8x32xf32>
    %c0_3 = arith.constant 0 : index
    %c0_4 = arith.constant 0 : index
    %c0_5 = arith.constant 0 : index
    %4 = vector.load %arg5[%c0_3, %c0_4, %c0_5] : memref<1x8x32xf32, #tpu.memory_space<vmem>>, vector<1x8x32xf32>
    %5 = vector.shape_cast %4 : vector<1x8x32xf32> to vector<8x32xf32>
    %c0_6 = arith.constant 0 : index
    %c0_7 = arith.constant 0 : index
    %c0_8 = arith.constant 0 : index
    %6 = vector.load %arg6[%c0_6, %c0_7, %c0_8] : memref<1x8x32xf32, #tpu.memory_space<vmem>>, vector<1x8x32xf32>
    %7 = vector.shape_cast %6 : vector<1x8x32xf32> to vector<8x32xf32>
    %c0_9 = arith.constant 0 : index
    %c0_10 = arith.constant 0 : index
    %c0_11 = arith.constant 0 : index
    %8 = vector.load %arg7[%c0_9, %c0_10, %c0_11] : memref<1x8x32xf32, #tpu.memory_space<vmem>>, vector<1x8x32xf32>
    %9 = vector.shape_cast %8 : vector<1x8x32xf32> to vector<8x32xf32>
    %cst = arith.constant dense<0.000000e+00> : vector<8x8xf32>
    %10 = tpu.matmul %3, %7, %cst {dimension_numbers = #tpu.dot_dimension_numbers<[1], [1], [0], [0], [0, 0, 1, 0], [], []>} : vector<8x32xf32>, vector<8x32xf32>, vector<8x8xf32> -> vector<8x8xf32>
    %11 = vector.broadcast %0 : f32 to vector<8x8xf32>
    %12 = arith.mulf %11, %10 : vector<8x8xf32>
    %13 = vector.broadcast %1 : f32 to vector<8x8xf32>
    %14 = arith.addf %12, %13 : vector<8x8xf32>
    %15 = arith.negf %14 : vector<8x8xf32>
    %16 = math.exp %15 : vector<8x8xf32>
    %cst_12 = arith.constant 1.000000e+00 : f32
    %17 = vector.broadcast %cst_12 : f32 to vector<8x8xf32>
    %18 = arith.addf %17, %16 : vector<8x8xf32>
    %19 = arith.divf %17, %18 : vector<8x8xf32>
    %cst_13 = arith.constant dense<0.000000e+00> : vector<8x8xf32>
    %20 = tpu.matmul %3, %9, %cst_13 {dimension_numbers = #tpu.dot_dimension_numbers<[1], [1], [0], [0], [0, 0, 1, 0], [], []>} : vector<8x32xf32>, vector<8x32xf32>, vector<8x8xf32> -> vector<8x8xf32>
    %21 = vector.broadcast %0 : f32 to vector<8x8xf32>
    %22 = arith.mulf %21, %20 : vector<8x8xf32>
    %23 = vector.broadcast %1 : f32 to vector<8x8xf32>
    %24 = arith.addf %22, %23 : vector<8x8xf32>
    %25 = arith.negf %24 : vector<8x8xf32>
    %26 = math.exp %25 : vector<8x8xf32>
    %cst_14 = arith.constant 1.000000e+00 : f32
    %27 = vector.broadcast %cst_14 : f32 to vector<8x8xf32>
    %28 = arith.addf %27, %26 : vector<8x8xf32>
    %29 = arith.divf %27, %28 : vector<8x8xf32>
    %30 = arith.addf %19, %29 : vector<8x8xf32>
    %cst_15 = arith.constant dense<0.000000e+00> : vector<8x8xf32>
    %31 = tpu.matmul %5, %7, %cst_15 {dimension_numbers = #tpu.dot_dimension_numbers<[1], [1], [0], [0], [0, 0, 1, 0], [], []>} : vector<8x32xf32>, vector<8x32xf32>, vector<8x8xf32> -> vector<8x8xf32>
    %32 = vector.broadcast %0 : f32 to vector<8x8xf32>
    %33 = arith.mulf %32, %31 : vector<8x8xf32>
    %34 = vector.broadcast %1 : f32 to vector<8x8xf32>
    %35 = arith.addf %33, %34 : vector<8x8xf32>
    %36 = arith.negf %35 : vector<8x8xf32>
    %37 = math.exp %36 : vector<8x8xf32>
    %cst_16 = arith.constant 1.000000e+00 : f32
    %38 = vector.broadcast %cst_16 : f32 to vector<8x8xf32>
    %39 = arith.addf %38, %37 : vector<8x8xf32>
    %40 = arith.divf %38, %39 : vector<8x8xf32>
    %41 = arith.addf %30, %40 : vector<8x8xf32>
    %cst_17 = arith.constant dense<0.000000e+00> : vector<8x8xf32>
    %42 = tpu.matmul %5, %9, %cst_17 {dimension_numbers = #tpu.dot_dimension_numbers<[1], [1], [0], [0], [0, 0, 1, 0], [], []>} : vector<8x32xf32>, vector<8x32xf32>, vector<8x8xf32> -> vector<8x8xf32>
    %43 = vector.broadcast %0 : f32 to vector<8x8xf32>
    %44 = arith.mulf %43, %42 : vector<8x8xf32>
    %45 = vector.broadcast %1 : f32 to vector<8x8xf32>
    %46 = arith.addf %44, %45 : vector<8x8xf32>
    %47 = arith.negf %46 : vector<8x8xf32>
    %48 = math.exp %47 : vector<8x8xf32>
    %cst_18 = arith.constant 1.000000e+00 : f32
    %49 = vector.broadcast %cst_18 : f32 to vector<8x8xf32>
    %50 = arith.addf %49, %48 : vector<8x8xf32>
    %51 = arith.divf %49, %50 : vector<8x8xf32>
    %52 = arith.addf %41, %51 : vector<8x8xf32>
    %cst_19 = arith.constant 2.500000e-01 : f32
    %53 = vector.broadcast %cst_19 : f32 to vector<8x8xf32>
    %54 = arith.mulf %52, %53 : vector<8x8xf32>
    %c0_20 = arith.constant 0 : index
    %c0_21 = arith.constant 0 : index
    %c0_22 = arith.constant 0 : index
    %55 = vector.load %arg8[%c0_20, %c0_21, %c0_22] : memref<1x8x8xf32, #tpu.memory_space<vmem>>, vector<1x8x8xf32>
    %56 = vector.shape_cast %55 : vector<1x8x8xf32> to vector<8x8xf32>
    %57 = vector.shape_cast %54 : vector<8x8xf32> to vector<1x8x8xf32>
    tpu.vector_store %arg8[%c0_20, %c0_21, %c0_22], %57 {strides = array<i32>} : memref<1x8x8xf32, #tpu.memory_space<vmem>>, vector<1x8x8xf32>,
    return
  }
  func.func @transform_0(%arg0: i32, %arg1: i32, %arg2: i32) -> i32 {
    %c0_i32 = arith.constant 0 : i32
    %c0_i32_0 = arith.constant 0 : i32
    return %c0_i32 : i32
  }
  func.func @transform_1(%arg0: i32, %arg1: i32, %arg2: i32) -> (i32, i32, i32) {
    %c0_i32 = arith.constant 0 : i32
    %c0_i32_0 = arith.constant 0 : i32
    return %arg0, %arg1, %c0_i32 : i32, i32, i32
  }
  func.func @transform_2(%arg0: i32, %arg1: i32, %arg2: i32) -> (i32, i32, i32) {
    %c0_i32 = arith.constant 0 : i32
    %c0_i32_0 = arith.constant 0 : i32
    return %arg0, %arg1, %c0_i32 : i32, i32, i32
  }
  func.func @transform_3(%arg0: i32, %arg1: i32, %arg2: i32) -> (i32, i32, i32) {
    %c0_i32 = arith.constant 0 : i32
    %c0_i32_0 = arith.constant 0 : i32
    return %arg0, %arg2, %c0_i32 : i32, i32, i32
  }
  func.func @transform_4(%arg0: i32, %arg1: i32, %arg2: i32) -> (i32, i32, i32) {
    %c0_i32 = arith.constant 0 : i32
    %c0_i32_0 = arith.constant 0 : i32
    return %arg0, %arg2, %c0_i32 : i32, i32, i32
  }
  func.func @transform_5(%arg0: i32, %arg1: i32, %arg2: i32) -> (i32, i32, i32) {
    %c0_i32 = arith.constant 0 : i32
    return %arg0, %arg1, %arg2 : i32, i32, i32
  }
}

</mosaic_0001>

<bundles_post_ra>
// kernel: tpu_custom_call.1
= control target key start
LH: loop header
LB: loop body
LE: loop exit
PB: predicated region body
PF: predicated region fallthrough
CT: control target
= control target key end

     0   :  { %s1682_s0 = inlined_call_operand.hbm [shape: f32[2], index: 0, kind: input, shape index: {}]   ;;  %s1683_s1 = inlined_call_operand.hbm [shape: f32[2,8,32], index: 1, kind: input, shape index: {}]   ;;  %s1684_s2 = inlined_call_operand.hbm [shape: f32[2,8,32], index: 2, kind: input, shape index: {}]   ;;  %s1685_s3 = inlined_call_operand.hbm [shape: f32[2,8,32], index: 3, kind: input, shape index: {}]   ;;  %s1686_s4 = inlined_call_operand.hbm [shape: f32[2,8,32], index: 4, kind: input, shape index: {}]   ;;  %s1687_s5 = inlined_call_operand.hbm [shape: f32[2,8,8], index: 5, kind: output, shape index: {}]  }
   0x1   :  { %1703 = sst [smem:[#allocation25_spill]] %s1683_s1 }
   0x2   :  { %1704 = sst [smem:[#allocation26_spill]] %s1684_s2 }
   0x3   :  { %10 = vsyncpa [#allocation5], 0 }
   0x4   :  { %11 = vsyncpa [#allocation3], 0 }
   0x5   :  { %13 = vsyncpa [#allocation3 + $0x1], 0 }
   0x6   :  { %14 = vsyncpa [#allocation8], 0 }
   0x7   :  { %16 = vsyncpa [#allocation8 + $0x1], 0 }
   0x8   :  { %17 = vsyncpa [#allocation11], 0 }
   0x9   :  { %19 = vsyncpa [#allocation11 + $0x1], 0 }
   0xa   :  { %20 = vsyncpa [#allocation4], 0 }
   0xb   :  { %22 = vsyncpa [#allocation4 + $0x1], 0  ;;  %s1353_s18 = smov 0   ;;  %s1355_s19 = smov 0  }
   0xc   :  { %s1357_s20 = smov 0   ;;  %s1359_s21 = smov 0  }
   0xd   :  { %s1361_s22 = smov 0   ;;  %s1363_s23 = smov 0  }
   0xe LB: > { %1705 = sst [smem:[#allocation18_spill]] %s1293_s18  ;;  %s47_s24 = sadd.s32 1, %s1309_s22  ;;  %s1313_s23 = sphi %s1363_s23, %s28_s23   ;;  %s1309_s22 = sphi %s1361_s22, %s1738_s22   ;;  %s1305_s21 = sphi %s1359_s21, %s1737_s21   ;;  %s1301_s20 = sphi %s1357_s20, %s1736_s20   ;;  %s1297_s19 = sphi %s1355_s19, %s1740_s19   ;;  %s1293_s18 = sphi %s1353_s18, %s1739_s18  }
   0xf   : > { %1706 = sst [smem:[#allocation19_spill]] %s1301_s20  ;;  %s77_s25 = sadd.s32 1, %s1301_s20 }
  0x10   : > { %1707 = sst [smem:[#allocation20_spill]] %s1309_s22  ;;  %p49_p0 = scmp.ge.s32.totalorder %s47_s24, 2 }
  0x11   : > { %1708 = sst [smem:[#allocation21_spill]] %s1313_s23  ;;  %p1688_p1 = scmp.ne.s32.totalorder %s1301_s20, %s1297_s19 }
  0x12   : > { %p85_p2 = scmp.eq.s32.totalorder %s1313_s23, 0  ;;  %s1742_s24 = smov (%p49_p0, %s47_s24), 0 }
  0x13   : > { %1709 = sst [smem:[#allocation22_spill]] %s1742_s24  ;;  %p1016_p5 = scmp.lt.s32.totalorder %s1313_s23, 2 }
  0x14   : > { %p86_p4 = por %p85_p2, %p1688_p1  ;;  %s72_s26 = ssub.s32 %s1309_s22, %s1742_s24 }
  0x15   : > { %s1398_s27 = sand.u32 1, %s1301_s20   ;;  %p75_p6 = scmp.eq.s32.totalorder %s72_s26, 0 }
  0x16   : > { %s1401_s28 = sshll.u32 %s1398_s27, 3  ;;  %s1404_s29 = sshll.u32 %s1309_s22, 7 }
  0x17   : > { %p1406_p7 = pnand %p1016_p5, %p86_p4  ;;  %s256_s7 = sand.u32 1, %s1313_s23  }
  0x18   : > { %s1411_s6 = scalar_select %p75_p6, %s1301_s20, %s77_s25  }
  0x19   : > { %s1710_s30 = scalar_select %p1406_p7, 1, 0 }
  0x1a   : > { %1711 = sst [smem:[#allocation23_spill]] %s1411_s6  ;;  %s1712_s2 = sld [smem:[#allocation26_spill]] }
  0x1b   : > { %s260_s11 = scalar_lea.vmem [#allocation7], %s1401_s28  ;;  %s1423_s13 = scalar_lea.sflag [#allocation8], %s256_s7 }
  0x1c   : > { %s268_s12 = sshll.u32 %s260_s11, 4  ;;  %p1429_p9 = pneg %p1406_p7  ;;  %s1421_s12 = int_to_ptr.vmem [resolvable:$true] %s268_s12 }
  0x20   : > { %s1418_s10 = scalar_lea.hbm %s1712_s2, %s1404_s29  ;;  %s1091_s25 = scalar_lea.hbm %s1712_s2, 256 }
  0x21   : > { %s1086_s14 = scalar_lea.hbm %s1418_s10, 128  ;;  %p1092_p12 = scmp.lt.u32.totalorder %s1418_s10, %s1712_s2 }
  0x22   : > { %p1087_p8 = scmp.ne.s32.totalorder %s1418_s10, %s1086_s14  ;;  %p1093_p13 = scmp.lt.u32.totalorder %s1091_s25, %s1086_s14 }
  0x23   : > { %p1095_p2 = scmp.lt.u32.totalorder %s1086_s14, %s1418_s10 }
  0x24   : > { %p1089_p10 = pnand %p1429_p9, %p1087_p8  ;;  %p1094_p0 = por %p1093_p13, %p1092_p12 }
  0x26   : > { %p1090_p11 = pneg %p1089_p10  ;;  %p1096_p4 = por %p1095_p2, %p1094_p0 }
  0x28   : > { %p1097_p5 = pnand %p1096_p4, %p1090_p11 }
  0x2a   : > { %1100 = shalt.err (!%p1097_p5)
}
  0x2b   : > { %s1101_s7 = scalar_lea.vmem %s1421_s12, 128  ;;  %s1315_s9 = smov [#allocation7]  }
  0x2c   : > { %p1102_p6 = scmp.ne.s32.totalorder %s1421_s12, %s1101_s7  ;;  %s1106_s11 = sshll.u32 %s1315_s9, 4  ;;  %s1107_s11 = int_to_ptr.vmem [resolvable:$false] %s1106_s11 }
  0x2d   : > { %s1108_s16 = scalar_lea.vmem %s1107_s11, 256  ;;  %p1109_p3 = scmp.lt.s32.totalorder %s1421_s12, %s1107_s11 }
  0x2e   : > { %p1104_p8 = pnand %p1102_p6, %p1429_p9  ;;  %p1110_p1 = scmp.lt.s32.totalorder %s1108_s16, %s1101_s7 }
  0x30   : > { %p1105_p10 = pneg %p1104_p8  ;;  %p1111_p12 = por %p1110_p1, %p1109_p3 }
  0x32   : > { %p1112_p13 = pnand %p1111_p12, %p1105_p10 }
  0x34   : > { %1115 = shalt.err (!%p1112_p13)
}
  0x35   : > { %1004 = dma.hbm_to_vmem [thread:$0]  (!%p1406_p7), %s1418_s10, 128, %s1421_s12, %s1423_s13  }
  0x36   : > { %s1454_s14 = sadd.s32 4294967295, %s1313_s23   ;;  %s916_s17 = sadd.s32 4294967294, %s1313_s23  }
  0x37   : > { %p90_p1 = scmp.ne.s32.totalorder %s1297_s19, %s1293_s18  ;;  %p1695_p3 = scmp.eq.s32.totalorder %s1454_s14, 0 }
  0x38   : > { %p202_p11 = scmp.eq.s32.totalorder %s1454_s14, 1  ;;  %p208_p0 = scmp.eq.s32.totalorder %s916_s17, 1 }
  0x39   : > { %p917_p2 = scmp.ge.s32.totalorder %s1313_s23, 1  ;;  %p1464_p4 = por %p1695_p3, %p90_p1 }
  0x3a   : > { %p1715_p5 = scmp.ne.s32.totalorder %s1301_s20, %s1297_s19  ;;  %p1475_p8 = por %p208_p0, %p90_p1 }
  0x3b   : > { %s1714_s25 = scalar_select %p1464_p4, 1, 0 }
  0x3c   : > { %p1471_p6 = por %p202_p11, %p1715_p5  ;;  %p215_p10 = scmp.lt.s32.totalorder %s1313_s23, 3 }
  0x3d   : > { %s1717_s12 = scalar_select %p1475_p8, 1, 0 }
  0x3e   : > { %s1716_s10 = scalar_select %p1471_p6, 1, 0 }
  0x3f   : > { %1718 = sst [smem:[#allocation24_spill]] %s1717_s12  ;;  %p1480_p12 = pnand %p917_p2, %p215_p10 }
  0x40   : > { %s1720_s1 = sld [smem:[#allocation25_spill]]  ;;  %s241_s11 = scalar_lea.vmem [#allocation6], %s1401_s28 }
  0x41   : > { %s1719_s26 = scalar_select %p1480_p12, 1, 0 }
  0x42   : > { %p994_p13 = pneg %p1480_p12  ;;  %s249_s16 = sshll.u32 %s241_s11, 4  ;;  %s1493_s16 = int_to_ptr.vmem [resolvable:$true] %s249_s16 }
  0x43   : > { %s1505_s7 = scalar_lea.hbm %s1685_s3, %s1404_s29  ;;  %s238_s24 = scalar_lea.sflag [#allocation3], %s1398_s27 }
  0x44   : > { %p1497_p1 = pnand %p994_p13, %p1695_p3 }
  0x46   : > { %s1488_s9 = scalar_lea.hbm %s1720_s1, %s1404_s29  ;;  %s1121_s20 = scalar_lea.hbm %s1720_s1, 256 }
  0x47   : > { %s1721_s17 = scalar_select %p1497_p1, 1, 0 }
  0x48   : > { %s1116_s22 = scalar_lea.hbm %s1488_s9, 128  ;;  %p1122_p5 = scmp.lt.u32.totalorder %s1488_s9, %s1720_s1 }
  0x49   : > { %p1117_p11 = scmp.ne.s32.totalorder %s1488_s9, %s1116_s22  ;;  %p1123_p10 = scmp.lt.u32.totalorder %s1121_s20, %s1116_s22 }
  0x4a   : > { %p1125_p3 = scmp.lt.u32.totalorder %s1116_s22, %s1488_s9 }
  0x4b   : > { %p1119_p0 = pnand %p1117_p11, %p1429_p9  ;;  %p1124_p13 = por %p1123_p10, %p1122_p5 }
  0x4d   : > { %p1120_p2 = pneg %p1119_p0  ;;  %p1126_p8 = por %p1125_p3, %p1124_p13 }
  0x4f   : > { %p1127_p6 = pnand %p1126_p8, %p1120_p2 }
  0x51   : > { %1130 = shalt.err (!%p1127_p6)
}
  0x52   : > { %s1131_s2 = scalar_lea.vmem %s1493_s16, 128  ;;  %s1316_s6 = smov [#allocation6]  }
  0x53   : > { %p1132_p11 = scmp.ne.s32.totalorder %s1493_s16, %s1131_s2  ;;  %s1136_s8 = sshll.u32 %s1316_s6, 4  ;;  %s1137_s8 = int_to_ptr.vmem [resolvable:$false] %s1136_s8 }
  0x54   : > { %s1138_s23 = scalar_lea.vmem %s1137_s8, 256  ;;  %p1139_p12 = scmp.lt.s32.totalorder %s1493_s16, %s1137_s8 }
  0x55   : > { %p1134_p0 = pnand %p1132_p11, %p1429_p9  ;;  %p1140_p1 = scmp.lt.s32.totalorder %s1138_s23, %s1131_s2 }
  0x57   : > { %p1135_p4 = pneg %p1134_p0  ;;  %p1141_p5 = por %p1140_p1, %p1139_p12 }
  0x59   : > { %p1142_p10 = pnand %p1141_p5, %p1135_p4 }
  0x5b   : > { %1145 = shalt.err (!%p1142_p10)
}
  0x5c   : > { %1001 = dma.hbm_to_vmem [thread:$0]  (!%p1406_p7), %s1488_s9, 128, %s1493_s16, %s238_s24  }
  0x5d   : > { %s279_s20 = scalar_lea.vmem [#allocation9], %s1401_s28  ;;  %s1146_s6 = scalar_lea.hbm %s1682_s0, 16 }
  0x5e   : > { %s287_s22 = sshll.u32 %s279_s20, 4  ;;  %p1147_p3 = scmp.ne.s32.totalorder %s1682_s0, %s1146_s6  ;;  %s288_s22 = int_to_ptr.vmem [resolvable:$true] %s287_s22 }
  0x5f   : > { %p1722_p6 = scmp.ne.s32.totalorder %s1721_s17, 0  ;;  %p1153_p1 = scmp.lt.u32.totalorder %s1146_s6, %s1682_s0 }
  0x61   : > { %p1148_p4 = pneg %p1722_p6 }
  0x63   : > { %p1149_p8 = pnand %p1148_p4, %p1147_p3 }
  0x65   : > { %p1150_p12 = pneg %p1149_p8 }
  0x67   : > { %p1155_p2 = pnand %p1153_p1, %p1150_p12 }
  0x69   : > { %1158 = shalt.err (!%p1155_p2)
}
  0x6a   : > { %s1317_s24 = smov [#allocation2]   ;;  %s1159_s1 = scalar_lea.hbm %s1505_s7, 128 }
  0x6b   : > { %997 = dma.hbm_to_smem (!%p1722_p6), %s1682_s0, 16, %s1317_s24, [#allocation5]  }
  0x6c   : > { %p1160_p13 = scmp.ne.s32.totalorder %s1505_s7, %s1159_s1  ;;  %s1164_s20 = scalar_lea.hbm %s1685_s3, 256 }
  0x6d   : > { %p1165_p5 = scmp.lt.u32.totalorder %s1505_s7, %s1685_s3  ;;  %p1166_p10 = scmp.lt.u32.totalorder %s1164_s20, %s1159_s1 }
  0x6e   : > { %p1162_p11 = pnand %p1160_p13, %p1429_p9  ;;  %p1168_p4 = scmp.lt.u32.totalorder %s1159_s1, %s1505_s7 }
  0x6f   : > { %p1167_p3 = por %p1166_p10, %p1165_p5 }
  0x70   : > { %p1163_p0 = pneg %p1162_p11 }
  0x71   : > { %p1169_p8 = por %p1168_p4, %p1167_p3 }
  0x73   : > { %p1170_p12 = pnand %p1169_p8, %p1163_p0 }
  0x75   : > { %1173 = shalt.err (!%p1170_p12)
}
  0x76   : > { %s1174_s11 = scalar_lea.vmem %s288_s22, 128  ;;  %s1318_s6 = smov [#allocation9]  }
  0x77   : > { %p1175_p6 = scmp.ne.s32.totalorder %s288_s22, %s1174_s11  ;;  %s1179_s2 = sshll.u32 %s1318_s6, 4  ;;  %s1180_s2 = int_to_ptr.vmem [resolvable:$false] %s1179_s2 }
  0x78   : > { %s1181_s8 = scalar_lea.vmem %s1180_s2, 256  ;;  %p1182_p13 = scmp.lt.s32.totalorder %s288_s22, %s1180_s2 }
  0x79   : > { %p1177_p1 = pnand %p1175_p6, %p1429_p9  ;;  %p1183_p11 = scmp.lt.s32.totalorder %s1181_s8, %s1174_s11 }
  0x7b   : > { %p1178_p2 = pneg %p1177_p1  ;;  %p1184_p7 = por %p1183_p11, %p1182_p13 }
  0x7d   : > { %p1185_p5 = pnand %p1184_p7, %p1178_p2 }
  0x7f   : > { %1188 = shalt.err (!%p1185_p5)
}
  0x80   : > { %p1723_p10 = scmp.ne.s32.totalorder %s1710_s30, 0  ;;  %s1568_s16 = scalar_lea.hbm %s1686_s4, %s1404_s29 }
  0x81   : > { %s298_s1 = scalar_lea.vmem [#allocation10], %s1401_s28  ;;  %s295_s23 = scalar_lea.sflag [#allocation11], %s1398_s27 }
  0x82   : > { %1007 = dma.hbm_to_vmem [thread:$0]  (!%p1723_p10), %s1505_s7, 128, %s288_s22, %s1423_s13  }
  0x83   : > { %s306_s18 = sshll.u32 %s298_s1, 4  ;;  %s1189_s20 = scalar_lea.hbm %s1568_s16, 128  ;;  %s307_s18 = int_to_ptr.vmem [resolvable:$true] %s306_s18 }
  0x84   : > { %p1190_p7 = scmp.ne.s32.totalorder %s1568_s16, %s1189_s20  ;;  %s1194_s7 = scalar_lea.hbm %s1686_s4, 256 }
  0x85   : > { %p1195_p4 = scmp.lt.u32.totalorder %s1568_s16, %s1686_s4  ;;  %p1196_p8 = scmp.lt.u32.totalorder %s1194_s7, %s1189_s20 }
  0x86   : > { %p1192_p0 = pnand %p1190_p7, %p1429_p9  ;;  %p1198_p6 = scmp.lt.u32.totalorder %s1189_s20, %s1568_s16 }
  0x87   : > { %p1197_p12 = por %p1196_p8, %p1195_p4 }
  0x88   : > { %p1193_p3 = pneg %p1192_p0 }
  0x89   : > { %p1199_p1 = por %p1198_p6, %p1197_p12 }
  0x8b   : > { %p1200_p2 = pnand %p1199_p1, %p1193_p3 }
  0x8d   : > { %1203 = shalt.err (!%p1200_p2)
}
  0x8e   : > { %s1204_s27 = scalar_lea.vmem %s307_s18, 128  ;;  %s1319_s28 = smov [#allocation10]  }
  0x8f   : > { %p1205_p13 = scmp.ne.s32.totalorder %s307_s18, %s1204_s27  ;;  %s1209_s12 = sshll.u32 %s1319_s28, 4  ;;  %s1210_s12 = int_to_ptr.vmem [resolvable:$false] %s1209_s12 }
  0x90   : > { %s1211_s11 = scalar_lea.vmem %s1210_s12, 256  ;;  %p1212_p7 = scmp.lt.s32.totalorder %s307_s18, %s1210_s12 }
  0x91   : > { %p1207_p11 = pnand %p1205_p13, %p1429_p9  ;;  %p1213_p0 = scmp.lt.s32.totalorder %s1211_s11, %s1204_s27 }
  0x93   : > { %p1208_p5 = pneg %p1207_p11  ;;  %p1214_p10 = por %p1213_p0, %p1212_p7 }
  0x95   : > { %p1215_p4 = pnand %p1214_p10, %p1208_p5 }
  0x97   : > { %1218 = shalt.err (!%p1215_p4)
}
  0x98   : > { %p1724_p8 = scmp.ne.s32.totalorder %s1710_s30, 0  ;;  %p1725_p3 = scmp.ne.s32.totalorder %s1719_s26, 0 }
  0x99   : > { %p1726_p12 = scmp.eq.s32.totalorder (!%p1725_p3), %s1454_s14, 0 }
  0x9a   : > { %1010 = dma.hbm_to_vmem [thread:$0]  (!%p1724_p8), %s1568_s16, 128, %s307_s18, %s295_s23  }
  0x9b   : > { %315 = sbr.rel (%p1725_p3) target bundleno = 446 (0x1be), region = 40 }
  0xa2   : > { %1272 = dma.done.wait (%p1726_p12), [#allocation5], 16   ;;  %p1727_p9 = pmov %p1726_p12 }
  0xa3   : > { %s1596_s15 = sand.u32 1, %s1297_s19   ;;  %p1728_p10 = scmp.ne.s32.totalorder %s1714_s25, 0 }
  0xa4   : > { %1274 = vsyncadd (%p1727_p9), [#allocation5], 4294967280  ;;  %s1599_s6 = sshll.u32 %s1596_s15, 3  ;;  %s322_s30 = scalar_lea.sflag [#allocation3], %s1596_s15 }
  0xa5   : > { %s325_s2 = scalar_lea.vmem [#allocation6], %s1599_s6 }
  0xa6   : > { %1276 = dma.done.wait (%p1728_p10), %s322_s30, 128  }
  0xa7   : > { %1278 = vsyncadd (%p1728_p10), %s322_s30, 4294967168  ;;  %s330_s26 = sand.u32 1, %s1454_s14   ;;  %s334_s24 = scalar_lea.vmem [#allocation7], %s1599_s6 }
  0xa8   : > { %s331_s8 = scalar_lea.sflag [#allocation8], %s330_s26 }
  0xa9   : > { %1280 = dma.done.wait (%p1728_p10), %s331_s8, 256  }
  0xaa   : > { %1282 = vsyncadd (%p1728_p10), %s331_s8, 4294967040  ;;  %s343_s9 = scalar_lea.vmem [#allocation9], %s1599_s6  ;;  %s349_s16 = scalar_lea.sflag [#allocation11], %s1596_s15 }
  0xab   : > { %s352_s1 = scalar_lea.vmem [#allocation10], %s1599_s6 }
  0xac   : > { %1284 = dma.done.wait (%p1728_p10), %s349_s16, 128  }
  0xad   : > { %1286 = vsyncadd (%p1728_p10), %s349_s16, 4294967168 }
  0xae   : > { %357 = sfence }
  0xaf   : > { %v399_v0 = vld [vmem:[%s343_s9] sm:$0xff]  ;;  %vm401_vm0 = vcmask 261120   ;;  %v400_v1 = vld [vmem:[%s352_s1] sm:$0xff]  ;;  %v1320_v2 = vmov 0.0   ;;  %vm1321_vm1 = vmmov 0   ;;  %s395_s14 = sld [smem:[#allocation2]] }
  0xb0   : > { %960 = vmatprep.subr.mxu0 %v1320_v2  ;;  %965 = vmatprep.subr.mxu1 %v1320_v2  ;;  %v397_v3 = vld [vmem:[%s325_s2] sm:$0xff]  ;;  %v398_v4 = vld [vmem:[%s334_s24] sm:$0xff]  ;;  %s935_s25 = sld [smem:[#allocation2 + $0x1]]  ;;  %s949_s18 = sshll.u32 %s1305_s21, 7  ;;  %vm732_vm2 = vcmask 64512  }
  0xb1   : > { %961 = vmatpush3.xpose.msk.msra.mxu0 %vm401_vm0, %v399_v0  ;;  %966 = vmatpush3.xpose.msk.msra.mxu1 %vm401_vm0, %v400_v1  ;;  %s394_s23 = scalar_lea.vmem [#allocation12], %s1599_s6  ;;  %s1633_s7 = scalar_lea.hbm %s1687_s5, %s949_s18 }
  0xb2   : > { %962 = vmatprep.mubr.msk.f32.mxu0 %vm1321_vm1, %v1320_v2  ;;  %967 = vmatprep.mubr.msk.f32.mxu1 %vm1321_vm1, %v1320_v2  ;;  %s750_s20 = sshll.u32 %s394_s23, 4  ;;  %s735_s22 = scalar_lea.sflag [#allocation4], %s1596_s15  ;;  %s1635_s20 = int_to_ptr.vmem [resolvable:$true] %s750_s20 }
  0xb3   : > { %970 = vmatprep.subr.mxu0 %v1320_v2  ;;  %975 = vmatprep.subr.mxu1 %v1320_v2  ;;  %s1219_s29 = scalar_lea.vmem %s1635_s20, 128  ;;  %p1729_p1 = scmp.ne.s32.totalorder %s1716_s10, 0 }
  0xb4   : > { %963 = vmatmul.mubr.msk.f32.vlgmr.msra.gmra.mrb[0].mxu0 %vm401_vm0, %v397_v3  ;;  %968 = vmatmul.mubr.msk.f32.vlgmr.msra.gmra.mrb[0].mxu1 %vm401_vm0, %v397_v3  ;;  %p1220_p6 = scmp.ne.s32.totalorder %s1635_s20, %s1219_s29  ;;  %s1322_s21 = smov [#allocation12]  }
  0xb5   : > { %971 = vmatpush3.xpose.msk.msra.mxu0 %vm401_vm0, %v399_v0  ;;  %972 = vmatprep.mubr.msk.f32.mxu0 %vm1321_vm1, %v1320_v2  ;;  %v478_v5 = vstv %s395_s14  ;;  %s1223_s27 = sshll.u32 %s1322_s21, 4  ;;  %s1224_s27 = int_to_ptr.vmem [resolvable:$false] %s1223_s27 }
  0xb6   : > { %976 = vmatpush3.xpose.msk.msra.mxu1 %vm401_vm0, %v400_v1  ;;  %977 = vmatprep.mubr.msk.f32.mxu1 %vm1321_vm1, %v1320_v2  ;;  %v480_v7 = vstv %s935_s25  ;;  %p1221_p2 = pnand %p1220_p6, %p1729_p1  ;;  %s1225_s28 = scalar_lea.vmem %s1224_s27, 256 }
  0xb7   : > { %p1226_p11 = scmp.lt.s32.totalorder %s1635_s20, %s1224_s27  ;;  %p1227_p5 = scmp.lt.s32.totalorder %s1225_s28, %s1219_s29 }
  0xb8   : > { %973 = vmatmul.mubr.msk.f32.vlgmr.msra.gmra.mrb[2].mxu0 %vm401_vm0, %v398_v4  ;;  %p1222_p13 = pneg %p1221_p2 }
  0xb9   : > { %978 = vmatmul.mubr.msk.f32.vlgmr.msra.gmra.mrb[2].mxu1 %vm401_vm0, %v398_v4  ;;  %p1228_p7 = por %p1227_p5, %p1226_p11 }
  0xbb   : > { %p1229_p0 = pnand %p1228_p7, %p1222_p13 }
 0x187   : > { %v474_v6 = vpop.f32.mrb[0].mxu0  ;;  %v557_v8 = vpop.f32.mrb[0].mxu1 }
 0x188   : > { %v479_v9 = vmul.f32 %v478_v5, %v474_v6  ;;  %v964_v10 = vpop.f32.mrb[1].mxu0  ;;  %v561_v11 = vmul.f32 %v557_v8, %v478_v5  ;;  %v969_v12 = vpop.f32.mrb[1].mxu1 }
 0x18a   : > { %v481_v13 = vadd.f32 %v480_v7, %v479_v9  ;;  %v562_v14 = vadd.f32 %v561_v11, %v480_v7 }
 0x18b   : > { %v639_v15 = vpop.f32.mrb[2].mxu0 }
 0x18c   : > { %v938_v16 = vmul.f32 -1.442695, %v481_v13  ;;  %v941_v17 = vmul.f32 -1.442695, %v562_v14  ;;  %v643_v18 = vmul.f32 %v639_v15, %v478_v5  ;;  %v974_v19 = vpop.f32.mrb[3].mxu0  ;;  %v718_v20 = vpop.f32.mrb[2].mxu1 }
 0x18d   : > { %v722_v21 = vmul.f32 %v718_v20, %v478_v5  ;;  %v979_v22 = vpop.f32.mrb[3].mxu1 }
 0x18e   : > { %1070 = vpow2.f32 %v938_v16  ;;  %v644_v23 = vadd.f32 %v643_v18, %v480_v7 }
 0x18f   : > { %1072 = vpow2.f32 %v941_v17  ;;  %v723_v24 = vadd.f32 %v722_v21, %v480_v7 }
 0x190   : > { %v944_v25 = vmul.f32 -1.442695, %v644_v23 }
 0x191   : > { %v947_v26 = vmul.f32 -1.442695, %v723_v24 }
 0x192   : > { %1074 = vpow2.f32 %v944_v25 }
 0x193   : > { %1076 = vpow2.f32 %v947_v26 }
 0x198   : > { %v1071_v27 = vpop.eup %1070 }
 0x199   : > { %v1073_v28 = vpop.eup %1072  ;;  %v485_v29 = vadd.f32 1.0, %v1071_v27 }
 0x19a   : > { %v566_v30 = vadd.f32 1.0, %v1073_v28 }
 0x19b   : > { %1078 = vrcp.f32 %v485_v29 }
 0x19c   : > { %v1075_v31 = vpop.eup %1074  ;;  %1080 = vrcp.f32 %v566_v30 }
 0x19d   : > { %v1077_v32 = vpop.eup %1076  ;;  %v648_v33 = vadd.f32 1.0, %v1075_v31 }
 0x19e   : > { %v727_v34 = vadd.f32 1.0, %v1077_v32 }
 0x19f   : > { %1082 = vrcp.f32 %v648_v33 }
 0x1a0   : > { %1084 = vrcp.f32 %v727_v34 }
 0x1a5   : > { %v1079_v35 = vpop.eup %1078 }
 0x1a6   : > { %v1081_v36 = vpop.eup %1080 }
 0x1a7   : > { %v569_v37 = vadd.f32 %v1081_v36, %v1079_v35 }
 0x1a9   : > { %v1083_v38 = vpop.eup %1082 }
 0x1aa   : > { %v1085_v39 = vpop.eup %1084  ;;  %v651_v40 = vadd.f32 %v1083_v38, %v569_v37 }
 0x1ac   : > { %v730_v41 = vadd.f32 %v1085_v39, %v651_v40 }
 0x1ae   : > { %v731_v42 = vmul.f32 0.25, %v730_v41 }
 0x1b0   : > { %733 = vst.msk [vmem:[%s394_s23] sm:$0xff] %vm732_vm2, %v731_v42 }
 0x1b1   : > { %1232 = shalt.err (!%p1229_p0)
}
 0x1b2   : > { %s1233_s12 = scalar_lea.hbm %s1633_s7, 128  ;;  %s1237_s6 = scalar_lea.hbm %s1687_s5, 256 }
 0x1b3   : > { %p1234_p4 = scmp.ne.s32.totalorder %s1633_s7, %s1233_s12  ;;  %p1238_p12 = scmp.lt.u32.totalorder %s1633_s7, %s1687_s5 }
 0x1b4   : > { %p1239_p9 = scmp.lt.u32.totalorder %s1237_s6, %s1233_s12  ;;  %p1241_p6 = scmp.lt.u32.totalorder %s1233_s12, %s1633_s7 }
 0x1b5   : > { %p1235_p8 = pnand %p1234_p4, %p1729_p1 }
 0x1b6   : > { %p1240_p10 = por %p1239_p9, %p1238_p12 }
 0x1b7   : > { %p1236_p3 = pneg %p1235_p8 }
 0x1b8   : > { %p1242_p2 = por %p1241_p6, %p1240_p10 }
 0x1ba   : > { %p1243_p13 = pnand %p1242_p2, %p1236_p3 }
 0x1bc   : > { %1246 = shalt.err (!%p1243_p13)
}
 0x1bd   : > { %992 = dma.vmem_to_hbm [thread:$0]  (%p1729_p1), %s1635_s20, 128, %s1633_s7, %s735_s22  }
 0x1be PF: > { %s1730_s26 = sld [smem:[#allocation18_spill]]  ;;  %s1731_s8 = sld [smem:[#allocation24_spill]] }
 0x1bf   : > { %s1732_s24 = sld [smem:[#allocation21_spill]] }
 0x1c4   : > { %s762_s9 = sand.u32 1, %s1730_s26   ;;  %p1733_p11 = scmp.ne.s32.totalorder %s1731_s8, 0 }
 0x1c5   : > { %p1734_p5 = scmp.ge.s32.totalorder %s1732_s24, 2  ;;  %s763_s16 = scalar_lea.sflag [#allocation4], %s762_s9 }
 0x1c7   : > { %p1012_p7 = pnand %p1734_p5, %p1733_p11 }
 0x1c9   : > { %1288 = dma.done.wait (!%p1012_p7), %s763_s16, 128  }
 0x1ca   : > { %1290 = vsyncadd (!%p1012_p7), %s763_s16, 4294967168  ;;  %s28_s23 = sadd.s32 1, %s1732_s24   ;;  %s1735_s1 = sld [smem:[#allocation19_spill]] }
 0x1cb   : > { %p25_p0 = scmp.ge.s32.totalorder %s28_s23, 4   ;;  %s1736_s20 = sld [smem:[#allocation23_spill]] }
 0x1cc   : > { %s1737_s21 = sld [smem:[#allocation20_spill]]  ;;  %s1738_s22 = sld [smem:[#allocation22_spill]] }
 0x1cd   : > { %s1739_s18 = smov %s1297_s19  ;;  %27 = sbr.rel (!%p25_p0) target bundleno = 14 (0xe), region = 127 }
 0x1d0   : > { %s1740_s19 = smov %s1735_s1 }
 0x1d4   :  { %768 = vsyncpa [#allocation3], 1 }
 0x1d5   :  { %770 = vsyncpa [#allocation3 + $0x1], 1 }
 0x1d6   :  { %771 = vsyncpa [#allocation8], 1 }
 0x1d7   :  { %773 = vsyncpa [#allocation8 + $0x1], 1 }
 0x1d8   :  { %774 = vsyncpa [#allocation11], 1 }
 0x1d9   :  { %776 = vsyncpa [#allocation11 + $0x1], 1 }
 0x1da   :  { %777 = vsyncpa [#allocation4], 1 }
 0x1db   :  { %779 = vsyncpa [#allocation4 + $0x1], 1 }
 0x1dc   :  { %780 = vsyncpa [#allocation5], 1 }
 0x1dd   :  { %782 = vsyncpa [#allocation5 + $0x1], 1 }

</bundles_post_ra>
